<compile_context>
chip_gen: v7x
topology: tpu7x:2x2x1
jax: 0.10.0
libtpu: 0.0.40
codegen_flags: <defaults>
</compile_context>

<pallas_src>
import functools

import jax
import jax.numpy as jnp
from jax.experimental import pallas as pl
from jax.experimental.pallas import tpu as pltpu
import numpy as np

LN_EPS = 1e-5   # PyTorch nn.LayerNorm default
LANE = 128
SUBLANE = 8


def _round_up(x, m):
    return (x + m - 1) // m * m


def _tpu_generation():
    """Trace-time hardware sniff: #TensorCores, VMEM capacity, preferred batch tile."""
    try:
        kind = jax.devices()[0].device_kind.lower()
    except Exception:  # pragma: no cover - e.g. no devices visible
        kind = ""
    if "v7" in kind:
        return {"n_tc": 2, "vmem_cap": 64 << 20, "batch_tile": 256}
    # v5e / v6e (and default): 1 TC, 128 MiB VMEM, 512-row tiles fill the MXU M dim.
    return {"n_tc": 1, "vmem_cap": 128 << 20, "batch_tile": 512}


def _const_block_spec(shape):
    """Grid-invariant block (weights/bias/gamma/beta): single-buffered in VMEM."""
    index_map = lambda i: (0,) * len(shape)
    try:
        return pl.BlockSpec(shape, index_map, pipeline_mode=pl.Buffered(1))
    except TypeError:  # older jax without pipeline_mode: fall back to default buffering
        return pl.BlockSpec(shape, index_map)


# ---------------- Fused Pallas kernel (layer loop unrolled at trace time) ----------------

def _make_fused_mlp_kernel(layer_sizes, dims_pad):
    """layer_sizes: real (unpadded) sizes [d0..dL]; dims_pad: lane-padded sizes.
    Kernel refs: x, [w0, b0], then [gamma, beta, w, b] per hidden layer, out."""
    n_layers = len(layer_sizes) - 1

    def kernel(*refs):
        x_ref = refs[0]
        out_ref = refs[-1]
        params = refs[1:-1]

        masks = {}                      # cache iota masks shared across layers
        h = x_ref[...]                  # (TB, d0_pad) f32; padded cols are exactly 0
        idx = 0
        for li in range(n_layers):
            if li == 0:
                w_ref, b_ref = params[idx], params[idx + 1]
                idx += 2
            else:
                g_ref, be_ref, w_ref, b_ref = params[idx:idx + 4]
                idx += 4
                d_in = layer_sizes[li]          # real LN width
                k_pad = dims_pad[li]
                inv_d = 1.0 / d_in
                # LayerNorm over the real feature dim; padded cols of h are 0.
                mu = jnp.sum(h, axis=-1, keepdims=True) * inv_d
                if d_in == k_pad:
                    diff = h - mu
                else:
                    mkey = (k_pad, d_in)
                    if mkey not in masks:
                        col = jax.lax.broadcasted_iota(jnp.int32, (1, k_pad), 1)
                        masks[mkey] = col < d_in
                    # Mask once; reuse masked diff for both variance and x-hat.
                    diff = jnp.where(masks[mkey], h - mu, 0.0)
                var = jnp.sum(diff * diff, axis=-1, keepdims=True) * inv_d  # biased var
                xhat = diff * jax.lax.rsqrt(var + LN_EPS)
                # gamma/beta are zero in padded cols -> padded cols of h stay 0.
                h = xhat * g_ref[...] + be_ref[...]
                h = jnp.maximum(h, 0.0)                 # ReLU (f32)
            # bf16 operands on the MXU fast path, f32 accumulation, f32 bias add.
            h = jnp.dot(h.astype(w_ref.dtype), w_ref[...],
                        preferred_element_type=jnp.float32) + b_ref[...]
        out_ref[...] = h.astype(out_ref.dtype)

    return kernel


# ---------------- One-time parameter packing (padding + bf16 cast) ----------------

def prepare_mlp_params(params, layer_sizes, weight_dtype=jnp.bfloat16):
    """Pad every parameter to lane-dense (128-multiple) shapes and cast weights to
    bf16 ONCE. The returned flat tuple is what the forward consumes every call --
    no per-call padding / extra HBM pass over the weights."""
    layer_sizes = tuple(layer_sizes)
    dims_pad = [_round_up(d, LANE) for d in layer_sizes]
    flat = []
    for li, p in enumerate(params):
        k_pad, n_pad = dims_pad[li], dims_pad[li + 1]
        k, n = layer_sizes[li], layer_sizes[li + 1]
        if li > 0:
            g = jnp.zeros((1, k_pad), jnp.float32).at[:, :k].set(p["gamma"])
            be = jnp.zeros((1, k_pad), jnp.float32).at[:, :k].set(p["beta"])
            flat += [g, be]
        w = jnp.zeros((k_pad, n_pad), weight_dtype).at[:k, :n].set(
            p["w"].astype(weight_dtype))
        b = jnp.zeros((1, n_pad), jnp.float32).at[:, :n].set(p["b"])
        flat += [w, b]
    return tuple(flat)


# ---------------- Jitted forward: pad x, single pallas_call, slice out ----------------

@functools.partial(jax.jit, static_argnames=("layer_sizes",))
def mlp_forward(x, padded_params, layer_sizes):
    layer_sizes = tuple(layer_sizes)
    n_layers = len(layer_sizes) - 1
    B, d_in = x.shape
    assert d_in == layer_sizes[0]
    dims_pad = [_round_up(d, LANE) for d in layer_sizes]

    info = _tpu_generation()

    # Batch tile: multiple of 8 sublanes, generation-aware cap.
    B8 = _round_up(B, SUBLANE)
    TB = min(B8, info["batch_tile"])
    # On v7x, force >=2 grid steps (when batch allows) so the "parallel" axis
    # shards across both TensorCores.
    if info["n_tc"] > 1 and B8 // TB < 2 and B8 >= 2 * SUBLANE:
        TB = _round_up((B8 + 1) // 2, SUBLANE)
    B_pad = _round_up(B, TB)

    x_p = jnp.zeros((B_pad, dims_pad[0]), jnp.float32).at[:B, :d_in].set(x)

    # BlockSpecs: x/out tiled over the batch grid; all params grid-invariant,
    # single-buffered, fully resident in VMEM across the whole call.
    # TODO(synk): if single-buffered weight bytes exceed ~40% of VMEM capacity,
    # stream each layer's weights in N-tiles with pltpu.emit_pipeline instead of
    # keeping every layer fully resident.
    in_specs = [pl.BlockSpec((TB, dims_pad[0]), lambda i: (i, 0))]
    for arr in padded_params:
        in_specs.append(_const_block_spec(arr.shape))

    # Cost estimate + VMEM budget (weights single-buffered, io tiles double-buffered).
    flops = sum(2 * B_pad * dims_pad[i] * dims_pad[i + 1] for i in range(n_layers))
    transc = B_pad * (n_layers - 1)                       # one rsqrt per row per LN
    weight_bytes = sum(int(np.prod(a.shape)) * a.dtype.itemsize for a in padded_params)
    bytes_accessed = int(x_p.size * 4 + weight_bytes + B_pad * dims_pad[-1] * 4)

    act_bytes = TB * sum(dims_pad) * 4                    # traced intermediates (upper bound)
    io_bytes = 2 * TB * (dims_pad[0] + dims_pad[-1]) * 4  # double-buffered x/out tiles
    budget = int(1.25 * (weight_bytes + act_bytes + io_bytes))
    vmem_limit = int(min(0.9 * info["vmem_cap"], max(budget, 32 << 20)))

    out_p = pl.pallas_call(
        _make_fused_mlp_kernel(layer_sizes, tuple(dims_pad)),
        out_shape=jax.ShapeDtypeStruct((B_pad, dims_pad[-1]), jnp.float32),
        grid=(B_pad // TB,),
        in_specs=in_specs,
        out_specs=pl.BlockSpec((TB, dims_pad[-1]), lambda i: (i, 0)),
        compiler_params=pltpu.CompilerParams(
            dimension_semantics=("parallel",),
            vmem_limit_bytes=vmem_limit),
        cost_estimate=pl.CostEstimate(
            flops=int(flops), transcendentals=int(transc),
            bytes_accessed=bytes_accessed),
    )(x_p, *padded_params)

    return out_p[:B, :layer_sizes[-1]]


# ---------------- Parameter init + pure-JAX reference ----------------

def init_mlp_params(key, layer_sizes):
    """PyTorch-shaped init: Linear(in,out) weight stored pre-transposed as (in,out)."""
    params = []
    sizes = list(layer_sizes)
    for i in range(len(sizes) - 1):
        fan_in, fan_out = sizes[i], sizes[i + 1]
        key, kw, kb = jax.random.split(key, 3)
        bound = 1.0 / np.sqrt(fan_in)
        w = jax.random.uniform(kw, (fan_in, fan_out), jnp.float32, -bound, bound)
        b = jax.random.uniform(kb, (1, fan_out), jnp.float32, -bound, bound)
        if i == 0:
            params.append({"w": w, "b": b})
        else:
            gamma = jnp.ones((1, fan_in), jnp.float32)
            beta = jnp.zeros((1, fan_in), jnp.float32)
            params.append({"gamma": gamma, "beta": beta, "w": w, "b": b})
    return params


def mlp_forward_ref(x, params):
    h = x @ params[0]["w"] + params[0]["b"]
    for p in params[1:]:
        mu = jnp.mean(h, axis=-1, keepdims=True)
        var = jnp.mean((h - mu) ** 2, axis=-1, keepdims=True)
        hn = (h - mu) / jnp.sqrt(var + LN_EPS) * p["gamma"] + p["beta"]
        hn = jnp.maximum(hn, 0.0)
        h = hn @ p["w"] + p["b"]
    return h


if __name__ == "__main__":
    key = jax.random.PRNGKey(0)
    # MLP(layers=[16, 32, 32, 8]) -> Linear(16,32), LN(32), ReLU, Linear(32,32),
    #                                LN(32), ReLU, Linear(32,8)
    layer_sizes = (16, 32, 32, 8)
    batch = 8

    key, kx, kp = jax.random.split(key, 3)
    x = jax.random.normal(kx, (batch, layer_sizes[0]), jnp.float32)
    params = init_mlp_params(kp, layer_sizes)

    # One-time padding + bf16 cast (NOT per forward call).
    padded = prepare_mlp_params(params, layer_sizes)

    out = mlp_forward(x, padded, layer_sizes=layer_sizes)
    out = jax.block_until_ready(out)

    ref = mlp_forward_ref(x, params)
    # bf16 matmul operands (f32 accumulation) vs the pure-f32 reference:
    # loosened tolerance accounts for bf16 operand rounding, not a kernel bug.
    np.testing.assert_allclose(np.asarray(out), np.asarray(ref), rtol=3e-2, atol=3e-2)

    print("KERNEL_OK")
</pallas_src>

<mosaic_0001>
module attributes {stable_mosaic.version = 11 : i64} {
  func.func @kernel(%arg0: i32, %arg1: memref<8x128xf32, #tpu.memory_space<vmem>>, %arg2: memref<128x128xbf16, #tpu.memory_space<vmem>>, %arg3: memref<1x128xf32, #tpu.memory_space<vmem>>, %arg4: memref<1x128xf32, #tpu.memory_space<vmem>>, %arg5: memref<1x128xf32, #tpu.memory_space<vmem>>, %arg6: memref<128x128xbf16, #tpu.memory_space<vmem>>, %arg7: memref<1x128xf32, #tpu.memory_space<vmem>>, %arg8: memref<1x128xf32, #tpu.memory_space<vmem>>, %arg9: memref<1x128xf32, #tpu.memory_space<vmem>>, %arg10: memref<128x128xbf16, #tpu.memory_space<vmem>>, %arg11: memref<1x128xf32, #tpu.memory_space<vmem>>, %arg12: memref<8x128xf32, #tpu.memory_space<vmem>>) attributes {dimension_semantics = [#tpu.dimension_semantics<parallel>], iteration_bounds = array<i64: 1>, scalar_prefetch = 0 : i64, scratch_operands = 0 : i64, tpu.core_type = #tpu.core_type<tc>, window_params = [{transform_indices = @transform_0, window_bounds = array<i64: 8, 128>}, {pipeline_mode = #tpu.pipeline_mode<synchronous>, transform_indices = @transform_1, window_bounds = array<i64: 128, 128>}, {pipeline_mode = #tpu.pipeline_mode<synchronous>, transform_indices = @transform_2, window_bounds = array<i64: 1, 128>}, {pipeline_mode = #tpu.pipeline_mode<synchronous>, transform_indices = @transform_3, window_bounds = array<i64: 1, 128>}, {pipeline_mode = #tpu.pipeline_mode<synchronous>, transform_indices = @transform_4, window_bounds = array<i64: 1, 128>}, {pipeline_mode = #tpu.pipeline_mode<synchronous>, transform_indices = @transform_5, window_bounds = array<i64: 128, 128>}, {pipeline_mode = #tpu.pipeline_mode<synchronous>, transform_indices = @transform_6, window_bounds = array<i64: 1, 128>}, {pipeline_mode = #tpu.pipeline_mode<synchronous>, transform_indices = @transform_7, window_bounds = array<i64: 1, 128>}, {pipeline_mode = #tpu.pipeline_mode<synchronous>, transform_indices = @transform_8, window_bounds = array<i64: 1, 128>}, {pipeline_mode = #tpu.pipeline_mode<synchronous>, transform_indices = @transform_9, window_bounds = array<i64: 128, 128>}, {pipeline_mode = #tpu.pipeline_mode<synchronous>, transform_indices = @transform_10, window_bounds = array<i64: 1, 128>}, {transform_indices = @transform_11, window_bounds = array<i64: 8, 128>}]} {
    %c0 = arith.constant 0 : index
    %c0_0 = arith.constant 0 : index
    %0 = vector.load %arg1[%c0, %c0_0] : memref<8x128xf32, #tpu.memory_space<vmem>>, vector<8x128xf32>
    %1 = arith.truncf %0 : vector<8x128xf32> to vector<8x128xbf16>
    %c0_1 = arith.constant 0 : index
    %c0_2 = arith.constant 0 : index
    %2 = vector.load %arg2[%c0_1, %c0_2] : memref<128x128xbf16, #tpu.memory_space<vmem>>, vector<128x128xbf16>
    %cst = arith.constant dense<0.000000e+00> : vector<8x128xf32>
    %3 = tpu.matmul %1, %2, %cst {dimension_numbers = #tpu.dot_dimension_numbers<[1], [0], [0], [1], [0, 0, 1, 1], [], []>} : vector<8x128xbf16>, vector<128x128xbf16>, vector<8x128xf32> -> vector<8x128xf32>
    %c0_3 = arith.constant 0 : index
    %c0_4 = arith.constant 0 : index
    %4 = vector.load %arg3[%c0_3, %c0_4] : memref<1x128xf32, #tpu.memory_space<vmem>>, vector<1x128xf32>
    %5 = vector.broadcast %4 : vector<1x128xf32> to vector<8x128xf32>
    %6 = arith.addf %3, %5 : vector<8x128xf32>
    %cst_5 = arith.constant dense<0.000000e+00> : vector<8xf32>
    %7 = vector.multi_reduction <add>, %6, %cst_5 [1] : vector<8x128xf32> to vector<8xf32>
    %8 = vector.shape_cast %7 : vector<8xf32> to vector<8x1xf32>
    %cst_6 = arith.constant 3.125000e-02 : f32
    %9 = vector.broadcast %cst_6 : f32 to vector<8x1xf32>
    %10 = arith.mulf %8, %9 : vector<8x1xf32>
    %11 = tpu.iota {dimensions = array<i32: 1>} : vector<1x128xi32>
    %c32_i32 = arith.constant 32 : i32
    %12 = vector.broadcast %c32_i32 : i32 to vector<1x128xi32>
    %13 = arith.cmpi slt, %11, %12 : vector<1x128xi32>
    %14 = vector.broadcast %10 : vector<8x1xf32> to vector<8x128xf32>
    %15 = arith.subf %6, %14 : vector<8x128xf32>
    %cst_7 = arith.constant 0.000000e+00 : f32
    %16 = vector.shape_cast %13 : vector<1x128xi1> to vector<1x128xi1>
    %17 = vector.broadcast %16 : vector<1x128xi1> to vector<8x128xi1>
    %18 = vector.broadcast %cst_7 : f32 to vector<8x128xf32>
    %19 = arith.select %17, %15, %18 : vector<8x128xi1>, vector<8x128xf32>
    %20 = arith.mulf %19, %19 : vector<8x128xf32>
    %cst_8 = arith.constant dense<0.000000e+00> : vector<8xf32>
    %21 = vector.multi_reduction <add>, %20, %cst_8 [1] : vector<8x128xf32> to vector<8xf32>
    %22 = vector.shape_cast %21 : vector<8xf32> to vector<8x1xf32>
    %cst_9 = arith.constant 3.125000e-02 : f32
    %23 = vector.broadcast %cst_9 : f32 to vector<8x1xf32>
    %24 = arith.mulf %22, %23 : vector<8x1xf32>
    %cst_10 = arith.constant 9.99999974E-6 : f32
    %25 = vector.broadcast %cst_10 : f32 to vector<8x1xf32>
    %26 = arith.addf %24, %25 : vector<8x1xf32>
    %27 = math.rsqrt %26 : vector<8x1xf32>
    %28 = vector.broadcast %27 : vector<8x1xf32> to vector<8x128xf32>
    %29 = arith.mulf %19, %28 : vector<8x128xf32>
    %c0_11 = arith.constant 0 : index
    %c0_12 = arith.constant 0 : index
    %30 = vector.load %arg4[%c0_11, %c0_12] : memref<1x128xf32, #tpu.memory_space<vmem>>, vector<1x128xf32>
    %31 = vector.broadcast %30 : vector<1x128xf32> to vector<8x128xf32>
    %32 = arith.mulf %29, %31 : vector<8x128xf32>
    %c0_13 = arith.constant 0 : index
    %c0_14 = arith.constant 0 : index
    %33 = vector.load %arg5[%c0_13, %c0_14] : memref<1x128xf32, #tpu.memory_space<vmem>>, vector<1x128xf32>
    %34 = vector.broadcast %33 : vector<1x128xf32> to vector<8x128xf32>
    %35 = arith.addf %32, %34 : vector<8x128xf32>
    %cst_15 = arith.constant 0.000000e+00 : f32
    %36 = vector.broadcast %cst_15 : f32 to vector<8x128xf32>
    %37 = arith.maximumf %35, %36 : vector<8x128xf32>
    %38 = arith.truncf %37 : vector<8x128xf32> to vector<8x128xbf16>
    %c0_16 = arith.constant 0 : index
    %c0_17 = arith.constant 0 : index
    %39 = vector.load %arg6[%c0_16, %c0_17] : memref<128x128xbf16, #tpu.memory_space<vmem>>, vector<128x128xbf16>
    %cst_18 = arith.constant dense<0.000000e+00> : vector<8x128xf32>
    %40 = tpu.matmul %38, %39, %cst_18 {dimension_numbers = #tpu.dot_dimension_numbers<[1], [0], [0], [1], [0, 0, 1, 1], [], []>} : vector<8x128xbf16>, vector<128x128xbf16>, vector<8x128xf32> -> vector<8x128xf32>
    %c0_19 = arith.constant 0 : index
    %c0_20 = arith.constant 0 : index
    %41 = vector.load %arg7[%c0_19, %c0_20] : memref<1x128xf32, #tpu.memory_space<vmem>>, vector<1x128xf32>
    %42 = vector.broadcast %41 : vector<1x128xf32> to vector<8x128xf32>
    %43 = arith.addf %40, %42 : vector<8x128xf32>
    %cst_21 = arith.constant dense<0.000000e+00> : vector<8xf32>
    %44 = vector.multi_reduction <add>, %43, %cst_21 [1] : vector<8x128xf32> to vector<8xf32>
    %45 = vector.shape_cast %44 : vector<8xf32> to vector<8x1xf32>
    %cst_22 = arith.constant 3.125000e-02 : f32
    %46 = vector.broadcast %cst_22 : f32 to vector<8x1xf32>
    %47 = arith.mulf %45, %46 : vector<8x1xf32>
    %48 = vector.broadcast %47 : vector<8x1xf32> to vector<8x128xf32>
    %49 = arith.subf %43, %48 : vector<8x128xf32>
    %cst_23 = arith.constant 0.000000e+00 : f32
    %50 = vector.shape_cast %13 : vector<1x128xi1> to vector<1x128xi1>
    %51 = vector.broadcast %50 : vector<1x128xi1> to vector<8x128xi1>
    %52 = vector.broadcast %cst_23 : f32 to vector<8x128xf32>
    %53 = arith.select %51, %49, %52 : vector<8x128xi1>, vector<8x128xf32>
    %54 = arith.mulf %53, %53 : vector<8x128xf32>
    %cst_24 = arith.constant dense<0.000000e+00> : vector<8xf32>
    %55 = vector.multi_reduction <add>, %54, %cst_24 [1] : vector<8x128xf32> to vector<8xf32>
    %56 = vector.shape_cast %55 : vector<8xf32> to vector<8x1xf32>
    %cst_25 = arith.constant 3.125000e-02 : f32
    %57 = vector.broadcast %cst_25 : f32 to vector<8x1xf32>
    %58 = arith.mulf %56, %57 : vector<8x1xf32>
    %cst_26 = arith.constant 9.99999974E-6 : f32
    %59 = vector.broadcast %cst_26 : f32 to vector<8x1xf32>
    %60 = arith.addf %58, %59 : vector<8x1xf32>
    %61 = math.rsqrt %60 : vector<8x1xf32>
    %62 = vector.broadcast %61 : vector<8x1xf32> to vector<8x128xf32>
    %63 = arith.mulf %53, %62 : vector<8x128xf32>
    %c0_27 = arith.constant 0 : index
    %c0_28 = arith.constant 0 : index
    %64 = vector.load %arg8[%c0_27, %c0_28] : memref<1x128xf32, #tpu.memory_space<vmem>>, vector<1x128xf32>
    %65 = vector.broadcast %64 : vector<1x128xf32> to vector<8x128xf32>
    %66 = arith.mulf %63, %65 : vector<8x128xf32>
    %c0_29 = arith.constant 0 : index
    %c0_30 = arith.constant 0 : index
    %67 = vector.load %arg9[%c0_29, %c0_30] : memref<1x128xf32, #tpu.memory_space<vmem>>, vector<1x128xf32>
    %68 = vector.broadcast %67 : vector<1x128xf32> to vector<8x128xf32>
    %69 = arith.addf %66, %68 : vector<8x128xf32>
    %cst_31 = arith.constant 0.000000e+00 : f32
    %70 = vector.broadcast %cst_31 : f32 to vector<8x128xf32>
    %71 = arith.maximumf %69, %70 : vector<8x128xf32>
    %72 = arith.truncf %71 : vector<8x128xf32> to vector<8x128xbf16>
    %c0_32 = arith.constant 0 : index
    %c0_33 = arith.constant 0 : index
    %73 = vector.load %arg10[%c0_32, %c0_33] : memref<128x128xbf16, #tpu.memory_space<vmem>>, vector<128x128xbf16>
    %cst_34 = arith.constant dense<0.000000e+00> : vector<8x128xf32>
    %74 = tpu.matmul %72, %73, %cst_34 {dimension_numbers = #tpu.dot_dimension_numbers<[1], [0], [0], [1], [0, 0, 1, 1], [], []>} : vector<8x128xbf16>, vector<128x128xbf16>, vector<8x128xf32> -> vector<8x128xf32>
    %c0_35 = arith.constant 0 : index
    %c0_36 = arith.constant 0 : index
    %75 = vector.load %arg11[%c0_35, %c0_36] : memref<1x128xf32, #tpu.memory_space<vmem>>, vector<1x128xf32>
    %76 = vector.broadcast %75 : vector<1x128xf32> to vector<8x128xf32>
    %77 = arith.addf %74, %76 : vector<8x128xf32>
    %c0_37 = arith.constant 0 : index
    %c0_38 = arith.constant 0 : index
    %78 = vector.load %arg12[%c0_37, %c0_38] : memref<8x128xf32, #tpu.memory_space<vmem>>, vector<8x128xf32>
    tpu.vector_store %arg12[%c0_37, %c0_38], %77 {strides = array<i32>} : memref<8x128xf32, #tpu.memory_space<vmem>>, vector<8x128xf32>,
    return
  }
  func.func @transform_0(%arg0: i32) -> (i32, i32) {
    %c0_i32 = arith.constant 0 : i32
    %c0_i32_0 = arith.constant 0 : i32
    return %arg0, %c0_i32 : i32, i32
  }
  func.func @transform_1(%arg0: i32) -> (i32, i32) {
    %c0_i32 = arith.constant 0 : i32
    %c0_i32_0 = arith.constant 0 : i32
    %c0_i32_1 = arith.constant 0 : i32
    return %c0_i32, %c0_i32_0 : i32, i32
  }
  func.func @transform_2(%arg0: i32) -> (i32, i32) {
    %c0_i32 = arith.constant 0 : i32
    %c0_i32_0 = arith.constant 0 : i32
    %c0_i32_1 = arith.constant 0 : i32
    return %c0_i32, %c0_i32_0 : i32, i32
  }
  func.func @transform_3(%arg0: i32) -> (i32, i32) {
    %c0_i32 = arith.constant 0 : i32
    %c0_i32_0 = arith.constant 0 : i32
    %c0_i32_1 = arith.constant 0 : i32
    return %c0_i32, %c0_i32_0 : i32, i32
  }
  func.func @transform_4(%arg0: i32) -> (i32, i32) {
    %c0_i32 = arith.constant 0 : i32
    %c0_i32_0 = arith.constant 0 : i32
    %c0_i32_1 = arith.constant 0 : i32
    return %c0_i32, %c0_i32_0 : i32, i32
  }
  func.func @transform_5(%arg0: i32) -> (i32, i32) {
    %c0_i32 = arith.constant 0 : i32
    %c0_i32_0 = arith.constant 0 : i32
    %c0_i32_1 = arith.constant 0 : i32
    return %c0_i32, %c0_i32_0 : i32, i32
  }
  func.func @transform_6(%arg0: i32) -> (i32, i32) {
    %c0_i32 = arith.constant 0 : i32
    %c0_i32_0 = arith.constant 0 : i32
    %c0_i32_1 = arith.constant 0 : i32
    return %c0_i32, %c0_i32_0 : i32, i32
  }
  func.func @transform_7(%arg0: i32) -> (i32, i32) {
    %c0_i32 = arith.constant 0 : i32
    %c0_i32_0 = arith.constant 0 : i32
    %c0_i32_1 = arith.constant 0 : i32
    return %c0_i32, %c0_i32_0 : i32, i32
  }
  func.func @transform_8(%arg0: i32) -> (i32, i32) {
    %c0_i32 = arith.constant 0 : i32
    %c0_i32_0 = arith.constant 0 : i32
    %c0_i32_1 = arith.constant 0 : i32
    return %c0_i32, %c0_i32_0 : i32, i32
  }
  func.func @transform_9(%arg0: i32) -> (i32, i32) {
    %c0_i32 = arith.constant 0 : i32
    %c0_i32_0 = arith.constant 0 : i32
    %c0_i32_1 = arith.constant 0 : i32
    return %c0_i32, %c0_i32_0 : i32, i32
  }
  func.func @transform_10(%arg0: i32) -> (i32, i32) {
    %c0_i32 = arith.constant 0 : i32
    %c0_i32_0 = arith.constant 0 : i32
    %c0_i32_1 = arith.constant 0 : i32
    return %c0_i32, %c0_i32_0 : i32, i32
  }
  func.func @transform_11(%arg0: i32) -> (i32, i32) {
    %c0_i32 = arith.constant 0 : i32
    %c0_i32_0 = arith.constant 0 : i32
    return %arg0, %c0_i32 : i32, i32
  }
}

</mosaic_0001>

<bundles_post_ra>
// kernel: mlp_forward.1
= control target key start
LH: loop header
LB: loop body
LE: loop exit
PB: predicated region body
PF: predicated region fallthrough
CT: control target
= control target key end

     0   :  { %16 = vsyncpa [#allocation3], 0  ;;  %s893_s0 = inlined_call_operand.vmem [shape: f32[8,128], index: 0, kind: input, shape index: {}]   ;;  %s894_s1 = inlined_call_operand.hbm [shape: bf16[128,128], index: 1, kind: input, shape index: {}]   ;;  %s895_s2 = inlined_call_operand.vmem [shape: f32[1,128], index: 2, kind: input, shape index: {}]   ;;  %s896_s3 = inlined_call_operand.vmem [shape: f32[1,128], index: 3, kind: input, shape index: {}]   ;;  %s897_s4 = inlined_call_operand.vmem [shape: f32[1,128], index: 4, kind: input, shape index: {}]   ;;  %s898_s5 = inlined_call_operand.hbm [shape: bf16[128,128], index: 5, kind: input, shape index: {}]   ;;  %s899_s6 = inlined_call_operand.vmem [shape: f32[1,128], index: 6, kind: input, shape index: {}]   ;;  %s900_s7 = inlined_call_operand.vmem [shape: f32[1,128], index: 7, kind: input, shape index: {}]   ;;  %s901_s8 = inlined_call_operand.vmem [shape: f32[1,128], index: 8, kind: input, shape index: {}]   ;;  %s902_s9 = inlined_call_operand.vmem [shape: bf16[128,128], index: 9, kind: input, shape index: {}]   ;;  %s903_s10 = inlined_call_operand.vmem [shape: f32[1,128], index: 10, kind: input, shape index: {}]   ;;  %s904_s11 = inlined_call_operand.hbm [shape: f32[8,128], index: 11, kind: output, shape index: {}]  }
   0x1   :  { %17 = vsyncpa [#allocation6], 0 }
   0x2   :  { %18 = vsyncpa [#allocation4], 0  ;;  %s710_s17 = smov [#allocation2]   ;;  %s638_s21 = scalar_lea.hbm %s894_s1, 1024 }
   0x3   :  { %s26_s18 = sshll.u32 %s710_s17, 4  ;;  %p639_p0 = scmp.ne.s32.totalorder %s894_s1, %s638_s21  ;;  %s27_s18 = int_to_ptr.vmem [resolvable:$true] %s26_s18 }
   0x4   :  { %p642_p1 = scmp.lt.u32.totalorder %s638_s21, %s894_s1 }
   0x6   :  { %p644_p2 = pnand %p642_p1, %p639_p0 }
   0x8   :  { %647 = shalt.err (!%p644_p2)
}
   0x9   :  { %s648_s26 = scalar_lea.vmem %s27_s18, 1024  ;;  %p653_p4 = scmp.lt.s32.totalorder %s27_s18, %s27_s18 }
   0xa   :  { %p649_p3 = scmp.ne.s32.totalorder %s27_s18, %s648_s26  ;;  %p654_p5 = scmp.lt.s32.totalorder %s648_s26, %s648_s26 }
   0xc   :  { %p655_p6 = por %p654_p5, %p653_p4 }
   0xe   :  { %p656_p7 = pnand %p655_p6, %p649_p3 }
  0x10   :  { %659 = shalt.err (!%p656_p7)
}
  0x11   :  { %s711_s27 = smov 64   ;;  %s712_s28 = smov 4  }
  0x12   :  { %32 = dma.hbm_to_vmem [thread:$0]  %s894_s1, 1024, %s27_s18, [#allocation3], %s711_s27, %s711_s27, %s712_s28  }
  0x13   :  { %s713_s12 = smov [#allocation5]   ;;  %s660_s16 = scalar_lea.hbm %s898_s5, 1024 }
  0x14   :  { %s44_s13 = sshll.u32 %s713_s12, 4  ;;  %p661_p8 = scmp.ne.s32.totalorder %s898_s5, %s660_s16  ;;  %s45_s13 = int_to_ptr.vmem [resolvable:$true] %s44_s13 }
  0x15   :  { %p664_p9 = scmp.lt.u32.totalorder %s660_s16, %s898_s5 }
  0x17   :  { %p666_p10 = pnand %p664_p9, %p661_p8 }
  0x19   :  { %669 = shalt.err (!%p666_p10)
}
  0x1a   :  { %s670_s22 = scalar_lea.vmem %s45_s13, 1024  ;;  %p675_p12 = scmp.lt.s32.totalorder %s45_s13, %s45_s13 }
  0x1b   :  { %p671_p11 = scmp.ne.s32.totalorder %s45_s13, %s670_s22  ;;  %p676_p13 = scmp.lt.s32.totalorder %s670_s22, %s670_s22 }
  0x1d   :  { %p677_p0 = por %p676_p13, %p675_p12 }
  0x1f   :  { %p678_p1 = pnand %p677_p0, %p671_p11 }
  0x21   :  { %681 = shalt.err (!%p678_p1)
}
  0x22   :  { %50 = dma.hbm_to_vmem [thread:$0]  %s898_s5, 1024, %s45_s13, [#allocation6], %s711_s27, %s711_s27, %s712_s28  }
  0x23   :  { %704 = dma.done.wait [#allocation3], 1024  }
  0x24   :  { %705 = vsyncadd [#allocation3], 4294966272 }
  0x25   :  { %706 = dma.done.wait [#allocation6], 1024  }
  0x26   :  { %707 = vsyncadd [#allocation6], 4294966272  ;;  %v714_v0 = vmov 0.0   ;;  %vm715_vm0 = vmmov 0   ;;  %v610_v1 = vld [vmem:[#allocation2] sm:$0xff]   ;;  %v611_v2 = vld [vmem:[#allocation2 + $0x8] sm:$0xff]   ;;  %v184_v19 = vlaneseq }
  0x27   :  { %543 = vmatprep.subr.bf16.mxu0 %v714_v0  ;;  %559 = vmatprep.mubr.msk.bf16.mxu0 %vm715_vm0, %v714_v0  ;;  %v612_v3 = vld [vmem:[#allocation2 + $0x10] sm:$0xff]   ;;  %v613_v4 = vld [vmem:[#allocation2 + $0x18] sm:$0xff]   ;;  %v614_v5 = vld [vmem:[#allocation2 + $0x20] sm:$0xff]  }
  0x28   :  { %563 = vmatprep.subr.bf16.mxu1 %v714_v0  ;;  %579 = vmatprep.mubr.msk.bf16.mxu1 %vm715_vm0, %v714_v0  ;;  %v615_v6 = vld [vmem:[#allocation2 + $0x28] sm:$0xff]   ;;  %v616_v7 = vld [vmem:[#allocation2 + $0x30] sm:$0xff]   ;;  %v617_v8 = vld [vmem:[#allocation2 + $0x38] sm:$0xff]   ;;  %v185_v20 = vand.u32 127, %v184_v19 }
  0x29   :  { %544 = vmatpush3.bf16.msra.mxu0 %v610_v1  ;;  %v68_v9 = vld [vmem:[%s893_s0] sm:$0xff]  ;;  %v619_v18 = vld [vmem:[#allocation5 + $0x8] sm:$0xff]   ;;  %v620_v26 = vld [vmem:[#allocation5 + $0x10] sm:$0xff]  }
  0x2a   :  { %545 = vmatprep.subr.bf16.mxu0 %v714_v0  ;;  %v69_v10 = vpack.c.bf16 %v68_v9, %v68_v9  ;;  %v485_v11 = vld [vmem:[%s895_s2] ss:$0 sm:$0xff]  ;;  %vm186_vm1 = vcmp.lt.s32.totalorder %v185_v20, 32  ;;  %v621_v27 = vld [vmem:[#allocation5 + $0x18] sm:$0xff]   ;;  %v623_v29 = vld [vmem:[#allocation5 + $0x28] sm:$0xff]   ;;  %s716_s2 = smov [#allocation7]  }
  0x2b   :  { %v618_v17 = vld [vmem:[#allocation5] sm:$0xff]   ;;  %v624_v30 = vld [vmem:[#allocation5 + $0x30] sm:$0xff]   ;;  %v625_v31 = vld [vmem:[#allocation5 + $0x38] sm:$0xff]   ;;  %s475_s26 = sshll.u32 %s716_s2, 4  ;;  %s476_s26 = int_to_ptr.vmem [resolvable:$true] %s475_s26 }
  0x2c   :  { %564 = vmatpush3.bf16.msra.mxu1 %v618_v17  ;;  %v622_v28 = vld [vmem:[#allocation5 + $0x20] sm:$0xff]   ;;  %v627_v50 = vld [vmem:[%s902_s9 + $0x8] sm:$0xff]   ;;  %v628_v56 = vld [vmem:[%s902_s9 + $0x10] sm:$0xff]   ;;  %p687_p3 = scmp.lt.s32.totalorder %s476_s26, %s476_s26 }
  0x2d   :  { %546 = vmatpush3.bf16.msra.mxu0 %v611_v2  ;;  %565 = vmatprep.subr.bf16.mxu1 %v714_v0  ;;  %v494_v36 = vld [vmem:[%s896_s3] ss:$0 sm:$0xff]  ;;  %v629_v57 = vld [vmem:[%s902_s9 + $0x18] sm:$0xff]   ;;  %v631_v59 = vld [vmem:[%s902_s9 + $0x28] sm:$0xff]  }
  0x2e   :  { %547 = vmatprep.subr.bf16.mxu0 %v714_v0  ;;  %v495_v38 = vld [vmem:[%s897_s4] ss:$0 sm:$0xff]  ;;  %v632_v60 = vld [vmem:[%s902_s9 + $0x30] sm:$0xff]   ;;  %v633_v61 = vld [vmem:[%s902_s9 + $0x38] sm:$0xff]  }
  0x2f   :  { %v496_v43 = vld [vmem:[%s899_s6] ss:$0 sm:$0xff] }
  0x30   :  { %566 = vmatpush3.bf16.msra.mxu1 %v619_v18  ;;  %v626_v49 = vld [vmem:[%s902_s9] sm:$0xff]  }
  0x31   :  { %548 = vmatpush3.bf16.msra.mxu0 %v612_v3  ;;  %567 = vmatprep.subr.bf16.mxu1 %v714_v0  ;;  %v630_v58 = vld [vmem:[%s902_s9 + $0x20] sm:$0xff]  }
  0x32   :  { %549 = vmatprep.subr.bf16.mxu0 %v714_v0  ;;  %v505_v3 = vld [vmem:[%s900_s7] ss:$0 sm:$0xff]  ;;  %s682_s7 = scalar_lea.vmem %s476_s26, 128 }
  0x33   :  { %p683_p2 = scmp.ne.s32.totalorder %s476_s26, %s682_s7  ;;  %p688_p4 = scmp.lt.s32.totalorder %s682_s7, %s682_s7 }
  0x34   :  { %568 = vmatpush3.bf16.msra.mxu1 %v620_v26 }
  0x35   :  { %550 = vmatpush3.bf16.msra.mxu0 %v613_v4  ;;  %569 = vmatprep.subr.bf16.mxu1 %v714_v0  ;;  %p689_p5 = por %p688_p4, %p687_p3 }
  0x36   :  { %551 = vmatprep.subr.bf16.mxu0 %v714_v0 }
  0x37   :  { %p690_p6 = pnand %p689_p5, %p683_p2 }
  0x38   :  { %570 = vmatpush3.bf16.msra.mxu1 %v621_v27 }
  0x39   :  { %552 = vmatpush3.bf16.msra.mxu0 %v614_v5  ;;  %571 = vmatprep.subr.bf16.mxu1 %v714_v0  ;;  %v506_v5 = vld [vmem:[%s901_s8] ss:$0 sm:$0xff] }
  0x3a   :  { %553 = vmatprep.subr.bf16.mxu0 %v714_v0 }
  0x3c   :  { %572 = vmatpush3.bf16.msra.mxu1 %v622_v28 }
  0x3d   :  { %554 = vmatpush3.bf16.msra.mxu0 %v615_v6  ;;  %573 = vmatprep.subr.bf16.mxu1 %v714_v0 }
  0x3e   :  { %555 = vmatprep.subr.bf16.mxu0 %v714_v0 }
  0x40   :  { %574 = vmatpush3.bf16.msra.mxu1 %v623_v29 }
  0x41   :  { %556 = vmatpush3.bf16.msra.mxu0 %v616_v7  ;;  %575 = vmatprep.subr.bf16.mxu1 %v714_v0 }
  0x42   :  { %557 = vmatprep.subr.bf16.mxu0 %v714_v0 }
  0x44   :  { %576 = vmatpush3.bf16.msra.mxu1 %v624_v30 }
  0x45   :  { %558 = vmatpush3.bf16.msra.mxu0 %v617_v8  ;;  %577 = vmatprep.subr.bf16.mxu1 %v714_v0 }
  0x46   :  { %583 = vmatprep.subr.bf16.mxu0 %v714_v0 }
  0x48   :  { %560 = vmatmul.mubr.bf16.vlgmr.msra.gmra.mrb[0].mxu0 %v69_v10  ;;  %578 = vmatpush3.bf16.msra.mxu1 %v625_v31 }
  0x49   :  { %599 = vmatprep.mubr.msk.bf16.mxu0 %vm715_vm0, %v714_v0  ;;  %584 = vmatpush3.bf16.msra.mxu0 %v626_v49 }
  0x4a   :  { %585 = vmatprep.subr.bf16.mxu0 %v714_v0 }
  0x4d   :  { %586 = vmatpush3.bf16.msra.mxu0 %v627_v50 }
  0x4e   :  { %587 = vmatprep.subr.bf16.mxu0 %v714_v0 }
  0x51   :  { %588 = vmatpush3.bf16.msra.mxu0 %v628_v56 }
  0x52   :  { %589 = vmatprep.subr.bf16.mxu0 %v714_v0 }
  0x55   :  { %590 = vmatpush3.bf16.msra.mxu0 %v629_v57 }
  0x56   :  { %591 = vmatprep.subr.bf16.mxu0 %v714_v0 }
  0x59   :  { %592 = vmatpush3.bf16.msra.mxu0 %v630_v58 }
  0x5a   :  { %593 = vmatprep.subr.bf16.mxu0 %v714_v0 }
  0x5d   :  { %594 = vmatpush3.bf16.msra.mxu0 %v631_v59 }
  0x5e   :  { %595 = vmatprep.subr.bf16.mxu0 %v714_v0 }
  0x61   :  { %596 = vmatpush3.bf16.msra.mxu0 %v632_v60 }
  0x62   :  { %597 = vmatprep.subr.bf16.mxu0 %v714_v0  ;;  %v507_v0 = vld [vmem:[%s903_s10] ss:$0 sm:$0xff] }
  0x65   :  { %598 = vmatpush3.bf16.msra.mxu0 %v633_v61 }
 0x11b   :  { %v175_v12 = vpop.f32.mrb[0].mxu0 }
 0x11c   :  { %v176_v13 = vadd.f32 %v485_v11, %v175_v12  ;;  %v561_v14 = vpop.f32.mrb[1].mxu0 }
 0x11d   :  { %v178_v15 = vpop.f32.mrb[2].mxu0 }
 0x11e   :  { %181 = vadd.xlane.f32.xlu0 %v176_v13  ;;  %v562_v16 = vpop.f32.mrb[3].mxu0 }
 0x1ab   :  { %v182_v21 = vpop.xlane.xlu0 %181 }
 0x1ac   :  { %v183_v22 = vmul.f32 0.03125, %v182_v21 }
 0x1ae   :  { %v187_v23 = vsub.f32 %v176_v13, %v183_v22 }
 0x1b0   :  { %v190_v24 = vsel %vm186_vm1, %v187_v23, 0.0 }
 0x1b1   :  { %v191_v25 = vmul.f32 %v190_v24, %v190_v24 }
 0x1b3   :  { %192 = vadd.xlane.f32.xlu0 %v191_v25 }
 0x240   :  { %v193_v32 = vpop.xlane.xlu0 %192 }
 0x241   :  { %v194_v33 = vmul.f32 0.03125, %v193_v32 }
 0x243   :  { %v195_v34 = vadd.f32 1e-05, %v194_v33 }
 0x245   :  { %634 = vrsqrt.f32 %v195_v34 }
 0x24f   :  { %v635_v35 = vpop.eup %634 }
 0x250   :  { %v197_v37 = vmul.f32 %v635_v35, %v190_v24 }
 0x252   :  { %v205_v39 = vmul.f32 %v494_v36, %v197_v37 }
 0x254   :  { %v213_v40 = vadd.f32 %v495_v38, %v205_v39 }
 0x256   :  { %v214_v41 = vmax.f32 %v213_v40, 0.0 }
 0x258   :  { %v215_v42 = vpack.c.bf16 %v214_v41, %v214_v41 }
 0x25a   :  { %580 = vmatmul.mubr.bf16.vlgmr.msra.gmra.mrb[0].mxu1 %v215_v42 }
 0x32d   :  { %v321_v44 = vpop.f32.mrb[0].mxu1 }
 0x32e   :  { %v322_v45 = vadd.f32 %v496_v43, %v321_v44  ;;  %v581_v46 = vpop.f32.mrb[1].mxu1 }
 0x32f   :  { %v324_v47 = vpop.f32.mrb[2].mxu1 }
 0x330   :  { %327 = vadd.xlane.f32.xlu1 %v322_v45  ;;  %v582_v48 = vpop.f32.mrb[3].mxu1 }
 0x3bd   :  { %v328_v51 = vpop.xlane.xlu1 %327 }
 0x3be   :  { %v329_v52 = vmul.f32 0.03125, %v328_v51 }
 0x3c0   :  { %v330_v53 = vsub.f32 %v322_v45, %v329_v52 }
 0x3c2   :  { %v331_v54 = vsel %vm186_vm1, %v330_v53, 0.0 }
 0x3c3   :  { %v332_v55 = vmul.f32 %v331_v54, %v331_v54 }
 0x3c5   :  { %333 = vadd.xlane.f32.xlu1 %v332_v55 }
 0x452   :  { %v334_v62 = vpop.xlane.xlu1 %333 }
 0x453   :  { %v335_v63 = vmul.f32 0.03125, %v334_v62 }
 0x455   :  { %v336_v1 = vadd.f32 1e-05, %v335_v63 }
 0x457   :  { %636 = vrsqrt.f32 %v336_v1 }
 0x461   :  { %v637_v2 = vpop.eup %636 }
 0x462   :  { %v338_v4 = vmul.f32 %v637_v2, %v331_v54 }
 0x464   :  { %v346_v6 = vmul.f32 %v505_v3, %v338_v4 }
 0x466   :  { %v354_v7 = vadd.f32 %v506_v5, %v346_v6 }
 0x468   :  { %v355_v8 = vmax.f32 %v354_v7, 0.0 }
 0x46a   :  { %v356_v9 = vpack.c.bf16 %v355_v8, %v355_v8 }
 0x46c   :  { %600 = vmatmul.mubr.bf16.vlgmr.msra.gmra.mrb[4].mxu0 %v356_v9 }
 0x53f   :  { %v462_v10 = vpop.f32.mrb[4].mxu0 }
 0x540   :  { %v463_v11 = vadd.f32 %v507_v0, %v462_v10  ;;  %v601_v12 = vpop.f32.mrb[5].mxu0 }
 0x541   :  { %v465_v13 = vpop.f32.mrb[6].mxu0 }
 0x542   :  { %468 = vst [vmem:[#allocation7] sm:$0xff] %v463_v11  ;;  %v602_v14 = vpop.f32.mrb[7].mxu0 }
 0x543   :  { %693 = shalt.err (!%p690_p6)
}
 0x544   :  { %s694_s10 = scalar_lea.hbm %s904_s11, 128 }
 0x545   :  { %p695_p7 = scmp.ne.s32.totalorder %s904_s11, %s694_s10  ;;  %p698_p8 = scmp.lt.u32.totalorder %s694_s10, %s904_s11 }
 0x547   :  { %p700_p9 = pnand %p698_p8, %p695_p7 }
 0x549   :  { %703 = shalt.err (!%p700_p9)
}
 0x54a   :  { %478 = dma.vmem_to_hbm [thread:$0]  %s476_s26, 128, %s904_s11, [#allocation4]  }
 0x54b   :  { %708 = dma.done.wait [#allocation4], 128  }
 0x54c   :  { %709 = vsyncadd [#allocation4], 4294967168 }
 0x54d   :  { %482 = vsyncpa [#allocation3], 1 }
 0x54e   :  { %483 = vsyncpa [#allocation6], 1 }
 0x54f   :  { %484 = vsyncpa [#allocation4], 1 }

</bundles_post_ra>
